<compile_context>
chip_gen: v5e
topology: v5e:2x2
jax: 0.10.0
libtpu: 0.0.40
codegen_flags: <defaults>
</compile_context>

<pallas_src>
import functools

import jax
import jax.numpy as jnp
from jax.experimental import pallas as pl
from jax.experimental.pallas import tpu as pltpu


def graphnets_kernel(x_ref, ew1_ref, eb1_ref, w2_ref, b2_ref, w3_ref, b3_ref,
                     out_ref, *, n_players, batches_per_tile, std_dim):
    f32 = jnp.float32
    cdt = ew1_ref.dtype                        # bf16 MXU operand dtype
    rows = batches_per_tile * n_players        # node rows in this tile

    # ---- edge MLP first layer (concat duplication already folded into ew1_eff) ----
    x = x_ref[...].astype(cdt)                                            # [rows, in_dim]
    h1 = jnp.dot(x, ew1_ref[...], preferred_element_type=f32) + eb1_ref[...]
    h1 = jnp.maximum(h1, 0.0).astype(cdt)                                 # [rows, h]

    # ---- per-batch reduce: sum the P node rows of each batch ----
    # Skinny [bpt, rows] one-hot matmul; mask built from iota compares (no integer
    # division, no HBM input).  Exact: edge_agg rows within a batch are identical.
    r_idx = jax.lax.broadcasted_iota(jnp.int32, (batches_per_tile, rows), 1)
    b_idx = jax.lax.broadcasted_iota(jnp.int32, (batches_per_tile, rows), 0)
    lo = b_idx * n_players
    red = jnp.where((r_idx >= lo) & (r_idx < lo + n_players), 1.0, 0.0).astype(cdt)
    s = jnp.dot(red, h1, preferred_element_type=f32)                      # [bpt, h]

    # ---- folded (ew2@nw1) layer + ReLU, then folded (nw2@[mw|sw]) heads ----
    nh = jnp.maximum(
        jnp.dot(s.astype(cdt), w2_ref[...], preferred_element_type=f32) + b2_ref[...],
        0.0)
    heads = (jnp.dot(nh.astype(cdt), w3_ref[...], preferred_element_type=f32)
             + b3_ref[...])                                               # [bpt, 2*std_dim]

    # Softplus(beta=1, threshold=20) applied only to the std half (lane mask;
    # both halves share vregs at these widths so the extra exp/log1p is free).
    sp = jnp.where(heads > 20.0, heads, jnp.log1p(jnp.exp(jnp.minimum(heads, 20.0))))
    col = jax.lax.broadcasted_iota(jnp.int32, heads.shape, 1)
    out_ref[...] = jnp.where(col >= std_dim, sp, heads).astype(out_ref.dtype)


def _pick_batches_per_tile(bs, n_players, *, max_rows=2048, min_rows_for_split=512):
    """Whole-batch row tiles.  Single tile at small sizes (the grid is a serial
    loop on 1-TC chips); split 2 ways for v7x megacore only when each step gets
    >= min_rows_for_split rows and the tiled blocks stay layout-legal."""
    total_rows = bs * n_players

    def legal(b):   # layout-legal row counts for both the x block and the output block
        if b == bs:
            return True                      # full-array blocks are always legal
        return bs % b == 0 and (b * n_players) % 8 == 0 and b % 8 == 0

    if total_rows <= max_rows:
        half = bs // 2
        if bs % 2 == 0 and half * n_players >= min_rows_for_split and legal(half):
            return half                      # 2 steps: one per v7x TensorCore
        return bs                            # single step: fewest-grid-steps wins
    cands = [b for b in range(1, bs) if legal(b) and b * n_players <= max_rows]
    return max(cands) if cands else bs


def graphnets_forward(x, params):
    bs, P, in_dim = x.shape
    std_dim = params["mw"].shape[1]
    cdt = jnp.bfloat16
    f32 = jnp.float32

    # ---- offline algebraic folding (exact, done in f32, then cast once) ----
    ew1_eff = (params["ew1"][:in_dim] + params["ew1"][in_dim:]).astype(cdt)   # [in_dim, h]
    eb1 = params["eb1"].astype(f32)                                           # [1, h]
    w2 = (params["ew2"] @ params["nw1"]).astype(cdt)                          # [h, h]
    b2 = (P * (params["eb2"] @ params["nw1"]) + params["nb1"]).astype(f32)    # [1, h]
    hw = jnp.concatenate([params["mw"], params["sw"]], axis=1)                # [h, 2*std_dim]
    hb = jnp.concatenate([params["mb"], params["sb"]], axis=1)                # [1, 2*std_dim]
    w3 = (params["nw2"] @ hw).astype(cdt)                                     # [h, 2*std_dim]
    b3 = (params["nb2"] @ hw + hb).astype(f32)                                # [1, 2*std_dim]

    weights = [ew1_eff, eb1, w2, b2, w3, b3]

    bpt = _pick_batches_per_tile(bs, P)
    TR = bpt * P
    n_tiles = bs // bpt

    x2d = x.reshape(bs * P, in_dim)          # f32; bf16 cast happens inside the kernel

    kernel = functools.partial(graphnets_kernel, n_players=P,
                               batches_per_tile=bpt, std_dim=std_dim)

    in_specs = [pl.BlockSpec((TR, in_dim), lambda i: (i, 0))]
    in_specs += [pl.BlockSpec(w.shape, lambda i: (0, 0)) for w in weights]

    # Per-batch output (rows within a batch are identical downstream of the
    # aggregation): [bs, 2*std_dim] -- P x smaller HBM writeback.
    out_shape = jax.ShapeDtypeStruct((bs, 2 * std_dim), jnp.float32)
    out_specs = pl.BlockSpec((bpt, 2 * std_dim), lambda i: (i, 0))

    fn = pl.pallas_call(
        kernel,
        grid=(n_tiles,),
        in_specs=in_specs,
        out_specs=out_specs,
        out_shape=out_shape,
        compiler_params=pltpu.CompilerParams(dimension_semantics=("parallel",)),
    )
    out = fn(x2d, *weights)                                  # [bs, 2*std_dim]

    mean = jnp.broadcast_to(out[:, None, :std_dim], (bs, P, std_dim))
    std = jnp.broadcast_to(out[:, None, std_dim:], (bs, P, std_dim))
    return mean, std


def init_params(key, in_dim, h_dim, std_dim):
    """Deterministic PyTorch-style init. Weights stored as [in, out] (pre-transposed)."""
    def linear(k, fan_in, fan_out):
        kw, kb = jax.random.split(k)
        bound = 1.0 / jnp.sqrt(fan_in)
        w = jax.random.uniform(kw, (fan_in, fan_out), jnp.float32, -bound, bound)
        b = jax.random.uniform(kb, (1, fan_out), jnp.float32, -bound, bound)
        return w, b

    keys = jax.random.split(key, 6)
    p = {}
    p["ew1"], p["eb1"] = linear(keys[0], 2 * in_dim, h_dim)
    p["ew2"], p["eb2"] = linear(keys[1], h_dim, h_dim)
    p["nw1"], p["nb1"] = linear(keys[2], h_dim, h_dim)
    p["nw2"], p["nb2"] = linear(keys[3], h_dim, h_dim)
    p["mw"], p["mb"] = linear(keys[4], h_dim, std_dim)
    p["sw"], p["sb"] = linear(keys[5], h_dim, std_dim)
    return p


def reference_forward(x, p):
    """Pure-JAX f32 reference mirroring the PyTorch forward exactly
    (repeat_interleave, concat(node_i, node_j=node_i), strided aggregation)."""
    bs, P, _ = x.shape
    node_i = jnp.repeat(x, P, axis=1)                   # repeat_interleave semantics
    ef = jnp.concatenate([node_i, node_i], axis=-1)
    h1 = jax.nn.relu(ef @ p["ew1"] + p["eb1"])
    eo = h1 @ p["ew2"] + p["eb2"]                       # [bs, P*P, h]
    edge_agg = eo.reshape(bs, P, P, -1).sum(axis=1)     # [:, p, :] = sum over stride-P rows
    nh1 = jax.nn.relu(edge_agg @ p["nw1"] + p["nb1"])
    node_out = nh1 @ p["nw2"] + p["nb2"]
    mean = node_out @ p["mw"] + p["mb"]
    s_pre = node_out @ p["sw"] + p["sb"]
    std = jnp.where(s_pre > 20.0, s_pre, jnp.log1p(jnp.exp(jnp.minimum(s_pre, 20.0))))
    return mean, std


if __name__ == "__main__":
    bs, n_players, in_dim = 4, 4, 8
    h_dim, std_dim = 32, 16

    key = jax.random.PRNGKey(0)
    kx, kp = jax.random.split(key)
    x = jax.random.normal(kx, (bs, n_players, in_dim), dtype=jnp.float32)
    params = init_params(kp, in_dim, h_dim, std_dim)

    mean, std = graphnets_forward(x, params)
    mean = jax.block_until_ready(mean)
    std = jax.block_until_ready(std)

    ref_mean, ref_std = reference_forward(x, params)
    # bf16 operands with f32 accumulation -> loose-ish tolerance vs the f32 reference.
    assert jnp.allclose(mean, ref_mean, atol=5e-2, rtol=5e-2)
    assert jnp.allclose(std, ref_std, atol=5e-2, rtol=5e-2)
    assert mean.shape == (bs, n_players, std_dim) and std.shape == (bs, n_players, std_dim)

    print("KERNEL_OK")
</pallas_src>

<mosaic_0001>
module attributes {stable_mosaic.version = 11 : i64} {
  func.func @graphnets_kernel(%arg0: i32, %arg1: memref<16x8xf32, #tpu.memory_space<vmem>>, %arg2: memref<8x32xbf16, #tpu.memory_space<vmem>>, %arg3: memref<1x32xf32, #tpu.memory_space<vmem>>, %arg4: memref<32x32xbf16, #tpu.memory_space<vmem>>, %arg5: memref<1x32xf32, #tpu.memory_space<vmem>>, %arg6: memref<32x32xbf16, #tpu.memory_space<vmem>>, %arg7: memref<1x32xf32, #tpu.memory_space<vmem>>, %arg8: memref<4x32xf32, #tpu.memory_space<vmem>>) attributes {dimension_semantics = [#tpu.dimension_semantics<parallel>], iteration_bounds = array<i64: 1>, scalar_prefetch = 0 : i64, scratch_operands = 0 : i64, tpu.core_type = #tpu.core_type<tc>, window_params = [{transform_indices = @transform_0, window_bounds = array<i64: 16, 8>}, {pipeline_mode = #tpu.pipeline_mode<synchronous>, transform_indices = @transform_1, window_bounds = array<i64: 8, 32>}, {pipeline_mode = #tpu.pipeline_mode<synchronous>, transform_indices = @transform_2, window_bounds = array<i64: 1, 32>}, {pipeline_mode = #tpu.pipeline_mode<synchronous>, transform_indices = @transform_3, window_bounds = array<i64: 32, 32>}, {pipeline_mode = #tpu.pipeline_mode<synchronous>, transform_indices = @transform_4, window_bounds = array<i64: 1, 32>}, {pipeline_mode = #tpu.pipeline_mode<synchronous>, transform_indices = @transform_5, window_bounds = array<i64: 32, 32>}, {pipeline_mode = #tpu.pipeline_mode<synchronous>, transform_indices = @transform_6, window_bounds = array<i64: 1, 32>}, {transform_indices = @transform_7, window_bounds = array<i64: 4, 32>}]} {
    %c0 = arith.constant 0 : index
    %c0_0 = arith.constant 0 : index
    %0 = vector.load %arg1[%c0, %c0_0] : memref<16x8xf32, #tpu.memory_space<vmem>>, vector<16x8xf32>
    %1 = arith.truncf %0 : vector<16x8xf32> to vector<16x8xbf16>
    %c0_1 = arith.constant 0 : index
    %c0_2 = arith.constant 0 : index
    %2 = vector.load %arg2[%c0_1, %c0_2] : memref<8x32xbf16, #tpu.memory_space<vmem>>, vector<8x32xbf16>
    %cst = arith.constant dense<0.000000e+00> : vector<16x32xf32>
    %3 = tpu.matmul %1, %2, %cst {dimension_numbers = #tpu.dot_dimension_numbers<[1], [0], [0], [1], [0, 0, 1, 1], [], []>} : vector<16x8xbf16>, vector<8x32xbf16>, vector<16x32xf32> -> vector<16x32xf32>
    %c0_3 = arith.constant 0 : index
    %c0_4 = arith.constant 0 : index
    %4 = vector.load %arg3[%c0_3, %c0_4] : memref<1x32xf32, #tpu.memory_space<vmem>>, vector<1x32xf32>
    %5 = vector.broadcast %4 : vector<1x32xf32> to vector<16x32xf32>
    %6 = arith.addf %3, %5 : vector<16x32xf32>
    %cst_5 = arith.constant 0.000000e+00 : f32
    %7 = vector.broadcast %cst_5 : f32 to vector<16x32xf32>
    %8 = arith.maximumf %6, %7 : vector<16x32xf32>
    %9 = arith.truncf %8 : vector<16x32xf32> to vector<16x32xbf16>
    %10 = tpu.iota {dimensions = array<i32: 1>} : vector<4x16xi32>
    %11 = tpu.iota {dimensions = array<i32: 0>} : vector<4x16xi32>
    %c4_i32 = arith.constant 4 : i32
    %12 = vector.broadcast %c4_i32 : i32 to vector<4x16xi32>
    %13 = arith.muli %11, %12 : vector<4x16xi32>
    %14 = arith.cmpi sge, %10, %13 : vector<4x16xi32>
    %c4_i32_6 = arith.constant 4 : i32
    %15 = vector.broadcast %c4_i32_6 : i32 to vector<4x16xi32>
    %16 = arith.addi %13, %15 : vector<4x16xi32>
    %17 = arith.cmpi slt, %10, %16 : vector<4x16xi32>
    %18 = arith.andi %14, %17 : vector<4x16xi1>
    %cst_7 = arith.constant 1.000000e+00 : f32
    %cst_8 = arith.constant 0.000000e+00 : f32
    %19 = vector.broadcast %cst_7 : f32 to vector<4x16xf32>
    %20 = vector.broadcast %cst_8 : f32 to vector<4x16xf32>
    %21 = arith.select %18, %19, %20 : vector<4x16xi1>, vector<4x16xf32>
    %22 = arith.truncf %21 : vector<4x16xf32> to vector<4x16xbf16>
    %cst_9 = arith.constant dense<0.000000e+00> : vector<4x32xf32>
    %23 = tpu.matmul %22, %9, %cst_9 {dimension_numbers = #tpu.dot_dimension_numbers<[1], [0], [0], [1], [0, 0, 1, 1], [], []>} : vector<4x16xbf16>, vector<16x32xbf16>, vector<4x32xf32> -> vector<4x32xf32>
    %24 = arith.truncf %23 : vector<4x32xf32> to vector<4x32xbf16>
    %c0_10 = arith.constant 0 : index
    %c0_11 = arith.constant 0 : index
    %25 = vector.load %arg4[%c0_10, %c0_11] : memref<32x32xbf16, #tpu.memory_space<vmem>>, vector<32x32xbf16>
    %cst_12 = arith.constant dense<0.000000e+00> : vector<4x32xf32>
    %26 = tpu.matmul %24, %25, %cst_12 {dimension_numbers = #tpu.dot_dimension_numbers<[1], [0], [0], [1], [0, 0, 1, 1], [], []>} : vector<4x32xbf16>, vector<32x32xbf16>, vector<4x32xf32> -> vector<4x32xf32>
    %c0_13 = arith.constant 0 : index
    %c0_14 = arith.constant 0 : index
    %27 = vector.load %arg5[%c0_13, %c0_14] : memref<1x32xf32, #tpu.memory_space<vmem>>, vector<1x32xf32>
    %28 = vector.broadcast %27 : vector<1x32xf32> to vector<4x32xf32>
    %29 = arith.addf %26, %28 : vector<4x32xf32>
    %cst_15 = arith.constant 0.000000e+00 : f32
    %30 = vector.broadcast %cst_15 : f32 to vector<4x32xf32>
    %31 = arith.maximumf %29, %30 : vector<4x32xf32>
    %32 = arith.truncf %31 : vector<4x32xf32> to vector<4x32xbf16>
    %c0_16 = arith.constant 0 : index
    %c0_17 = arith.constant 0 : index
    %33 = vector.load %arg6[%c0_16, %c0_17] : memref<32x32xbf16, #tpu.memory_space<vmem>>, vector<32x32xbf16>
    %cst_18 = arith.constant dense<0.000000e+00> : vector<4x32xf32>
    %34 = tpu.matmul %32, %33, %cst_18 {dimension_numbers = #tpu.dot_dimension_numbers<[1], [0], [0], [1], [0, 0, 1, 1], [], []>} : vector<4x32xbf16>, vector<32x32xbf16>, vector<4x32xf32> -> vector<4x32xf32>
    %c0_19 = arith.constant 0 : index
    %c0_20 = arith.constant 0 : index
    %35 = vector.load %arg7[%c0_19, %c0_20] : memref<1x32xf32, #tpu.memory_space<vmem>>, vector<1x32xf32>
    %36 = vector.broadcast %35 : vector<1x32xf32> to vector<4x32xf32>
    %37 = arith.addf %34, %36 : vector<4x32xf32>
    %cst_21 = arith.constant 2.000000e+01 : f32
    %38 = vector.broadcast %cst_21 : f32 to vector<4x32xf32>
    %39 = arith.cmpf ogt, %37, %38 : vector<4x32xf32>
    %cst_22 = arith.constant 2.000000e+01 : f32
    %40 = vector.broadcast %cst_22 : f32 to vector<4x32xf32>
    %41 = arith.minimumf %37, %40 : vector<4x32xf32>
    %42 = math.exp %41 : vector<4x32xf32>
    %43 = math.log1p %42 : vector<4x32xf32>
    %44 = arith.select %39, %37, %43 : vector<4x32xi1>, vector<4x32xf32>
    %45 = tpu.iota {dimensions = array<i32: 1>} : vector<4x32xi32>
    %c16_i32 = arith.constant 16 : i32
    %46 = vector.broadcast %c16_i32 : i32 to vector<4x32xi32>
    %47 = arith.cmpi sge, %45, %46 : vector<4x32xi32>
    %48 = arith.select %47, %44, %37 : vector<4x32xi1>, vector<4x32xf32>
    %c0_23 = arith.constant 0 : index
    %c0_24 = arith.constant 0 : index
    %49 = vector.load %arg8[%c0_23, %c0_24] : memref<4x32xf32, #tpu.memory_space<vmem>>, vector<4x32xf32>
    tpu.vector_store %arg8[%c0_23, %c0_24], %48 {strides = array<i32>} : memref<4x32xf32, #tpu.memory_space<vmem>>, vector<4x32xf32>,
    return
  }
  func.func @transform_0(%arg0: i32) -> (i32, i32) {
    %c0_i32 = arith.constant 0 : i32
    %c0_i32_0 = arith.constant 0 : i32
    return %arg0, %c0_i32 : i32, i32
  }
  func.func @transform_1(%arg0: i32) -> (i32, i32) {
    %c0_i32 = arith.constant 0 : i32
    %c0_i32_0 = arith.constant 0 : i32
    %c0_i32_1 = arith.constant 0 : i32
    return %c0_i32, %c0_i32_0 : i32, i32
  }
  func.func @transform_2(%arg0: i32) -> (i32, i32) {
    %c0_i32 = arith.constant 0 : i32
    %c0_i32_0 = arith.constant 0 : i32
    %c0_i32_1 = arith.constant 0 : i32
    return %c0_i32, %c0_i32_0 : i32, i32
  }
  func.func @transform_3(%arg0: i32) -> (i32, i32) {
    %c0_i32 = arith.constant 0 : i32
    %c0_i32_0 = arith.constant 0 : i32
    %c0_i32_1 = arith.constant 0 : i32
    return %c0_i32, %c0_i32_0 : i32, i32
  }
  func.func @transform_4(%arg0: i32) -> (i32, i32) {
    %c0_i32 = arith.constant 0 : i32
    %c0_i32_0 = arith.constant 0 : i32
    %c0_i32_1 = arith.constant 0 : i32
    return %c0_i32, %c0_i32_0 : i32, i32
  }
  func.func @transform_5(%arg0: i32) -> (i32, i32) {
    %c0_i32 = arith.constant 0 : i32
    %c0_i32_0 = arith.constant 0 : i32
    %c0_i32_1 = arith.constant 0 : i32
    return %c0_i32, %c0_i32_0 : i32, i32
  }
  func.func @transform_6(%arg0: i32) -> (i32, i32) {
    %c0_i32 = arith.constant 0 : i32
    %c0_i32_0 = arith.constant 0 : i32
    %c0_i32_1 = arith.constant 0 : i32
    return %c0_i32, %c0_i32_0 : i32, i32
  }
  func.func @transform_7(%arg0: i32) -> (i32, i32) {
    %c0_i32 = arith.constant 0 : i32
    %c0_i32_0 = arith.constant 0 : i32
    return %arg0, %c0_i32 : i32, i32
  }
}

</mosaic_0001>

<bundles_post_ra>
// kernel: tpu_custom_call.1
= control target key start
LH: loop header
LB: loop body
LE: loop exit
PB: predicated region body
PF: predicated region fallthrough
CT: control target
= control target key end

     0   :  { %12 = vsyncpa [#allocation3], 0  ;;  %s384_s0 = inlined_call_operand.vmem [shape: f32[16,8], index: 0, kind: input, shape index: {}]   ;;  %s385_s1 = inlined_call_operand.vmem [shape: bf16[8,32], index: 1, kind: input, shape index: {}]   ;;  %s386_s2 = inlined_call_operand.vmem [shape: f32[1,32], index: 2, kind: input, shape index: {}]   ;;  %s387_s3 = inlined_call_operand.vmem [shape: bf16[32,32], index: 3, kind: input, shape index: {}]   ;;  %s388_s4 = inlined_call_operand.vmem [shape: f32[1,32], index: 4, kind: input, shape index: {}]   ;;  %s389_s5 = inlined_call_operand.hbm [shape: bf16[32,32], index: 5, kind: input, shape index: {}]   ;;  %s390_s6 = inlined_call_operand.vmem [shape: f32[1,32], index: 6, kind: input, shape index: {}]   ;;  %s391_s7 = inlined_call_operand.hbm [shape: f32[4,32], index: 7, kind: output, shape index: {}]  }
   0x1   :  { %13 = vsyncpa [#allocation4], 0  ;;  %s28_s26 = sshll.u32 %s389_s5, 4  ;;  %s304_s27 = smov [#allocation2]   ;;  %s29_s26 = int_to_ptr.hbm [resolvable:$true] %s28_s26 }
   0x2   :  { %s30_s28 = sshll.u32 %s304_s27, 4  ;;  %s305_s29 = smov 64   ;;  %s31_s28 = int_to_ptr.vmem [resolvable:$true] %s30_s28 }
   0x3   :  { %s306_s30 = smov 4  }
   0x4   :  { %36 = dma.hbm_to_vmem [thread:$0]  %s29_s26, 256, %s31_s28, [#allocation3], %s305_s29, %s305_s29, %s306_s30  }
   0x5   :  { %300 = dma.done.wait [#allocation3], 256  }
   0x6   :  { %301 = vsyncadd [#allocation3], 4294967040  ;;  %vm56_vm0 = vcmask 1043456   ;;  %v47_v0 = vld [vmem:[%s385_s1] sm:$0xf]  ;;  %v45_v2 = vld [vmem:[%s384_s0 + $0x8] sm:$0xff]  ;;  %v77_v6 = vlaneseq }
   0x7   :  { %v44_v1 = vld [vmem:[%s384_s0] sm:$0xff]  ;;  %v58_v3 = vsel %vm56_vm0, %v47_v0, 0  ;;  %vm52_vm1 = vcmask 64512   ;;  %v237_v5 = vld [vmem:[%s387_s3 + $0x8] sm:$0xff]  ;;  %v307_v18 = vmov 0.0   ;;  %vm88_vm5 = vcmask 130048  }
   0x8   :  { %v46_v4 = vpack.c.bf16 %v45_v2, %v44_v1  ;;  %67 = vmatpush.bf16.msra.mxu0 %v58_v3  ;;  %136 = vmatpush.bf16.msra.mxu2 %v237_v5  ;;  %v80_v7 = vshrl.u32 %v77_v6, 7  ;;  %v364_v10 = vand.u32 127, %v77_v6  ;;  %v245_v12 = vld [vmem:[%s386_s2] ss:$0 sm:$0xff]  ;;  %vm126_vm6 = vcmask 261120   ;;  %v239_v26 = vld [vmem:[#allocation2 + $0x8] sm:$0xff] }
   0x9   :  { %v236_v22 = vld [vmem:[%s387_s3] sm:$0xff]  ;;  %174 = vmatpush.bf16.msra.mxu3 %v239_v26  ;;  %vm197_vm10 = vcmask 257024  }
   0xa   :  { %v81_v8 = vmul.u32 4, %v80_v7  ;;  %v238_v27 = vld [vmem:[#allocation2] sm:$0xff]  ;;  %vm195_vm8 = vcmp.ge.s32.totalorder %v364_v10, 16 }
   0xb   :  { %216 = vmatmul.msk.bf16.vlgmr.msra.gmra.mxu0 %vm52_vm1, %v46_v4  ;;  %v246_v28 = vld [vmem:[%s388_s4] ss:$0 sm:$0xff]  ;;  %s308_s4 = smov [#allocation5]  }
   0xc   :  { %v83_v11 = vadd.s32 4, %v81_v8  ;;  %vm82_vm2 = vcmp.ge.s32.totalorder %v364_v10, %v81_v8  ;;  %137 = vmatpush.bf16.msra.mxu2 %v236_v22  ;;  %v247_v34 = vld [vmem:[%s390_s6] ss:$0 sm:$0xff]  ;;  %s204_s19 = sshll.u32 %s308_s4, 4  ;;  %s206_s6 = sshll.u32 %s391_s7, 4  ;;  %s205_s19 = int_to_ptr.vmem [resolvable:$true] %s204_s19  ;;  %s207_s6 = int_to_ptr.hbm [resolvable:$true] %s206_s6 }
   0xd   :  { %175 = vmatpush.bf16.msra.mxu3 %v238_v27 }
   0xe   :  { %vm84_vm3 = vcmp.lt.s32.totalorder %v364_v10, %v83_v11 }
   0xf   :  { %vm85_vm4 = vmand %vm82_vm2, %vm84_vm3 }
  0x10   :  { %v86_v19 = vsel %vm85_vm4, 1.0, %v307_v18 }
  0x11   :  { %v87_v21 = vpack.c.bf16 %v86_v19, %v86_v19 }
  0x88   :  { %v69_v9 = vpop.f32.mrf.mxu0 }
  0x89   :  { %v70_v13 = vadd.f32 %v245_v12, %v69_v9 }
  0x8b   :  { %v74_v16 = vmax.f32 %v70_v13, 0.0 }
  0x90   :  { %v71_v14 = vpop.f32.mrf.mxu0 }
  0x91   :  { %v72_v15 = vadd.f32 %v245_v12, %v71_v14 }
  0x93   :  { %v75_v17 = vmax.f32 %v72_v15, 0.0 }
  0x95   :  { %v76_v20 = vpack.c.bf16 %v75_v17, %v74_v16 }
  0x97   :  { %99 = vmatpush.bf16.msra.mxu1 %v76_v20 }
  0x9a   :  { %217 = vmatmul.msk.bf16.vlgmr.msra.gmra.mxu1 %vm88_vm5, %v87_v21 }
 0x117   :  { %v101_v23 = vpop.f32.mrf.mxu1 }
 0x118   :  { %v105_v24 = vpack.c.bf16 %v101_v23, %v101_v23 }
 0x11a   :  { %226 = vmatmul.msk.bf16.vlgmr.msra.gmra.mxu2 %vm126_vm6, %v105_v24 }
 0x11f   :  { %v103_v25 = vpop.f32.mrf.mxu1 }
 0x19d   :  { %v139_v29 = vpop.f32.mrf.mxu2 }
 0x19e   :  { %v140_v30 = vadd.f32 %v246_v28, %v139_v29 }
 0x1a0   :  { %v143_v31 = vmax.f32 %v140_v30, 0.0 }
 0x1a2   :  { %v144_v32 = vpack.c.bf16 %v143_v31, %v143_v31 }
 0x1a4   :  { %235 = vmatmul.msk.bf16.vlgmr.msra.gmra.mxu3 %vm126_vm6, %v144_v32 }
 0x1a5   :  { %v141_v33 = vpop.f32.mrf.mxu2 }
 0x227   :  { %v177_v35 = vpop.f32.mrf.mxu3 }
 0x228   :  { %v178_v36 = vadd.f32 %v247_v34, %v177_v35 }
 0x22a   :  { %v182_v37 = vmin.f32 %v178_v36, 20.0  ;;  %vm181_vm9 = vcmp.gt.f32.partialorder %v178_v36, 20.0 }
 0x22c   :  { %v183_v38 = vmul.f32 1.442695, %v182_v37 }
 0x22e   :  { %248 = vpow2.f32 %v183_v38 }
 0x22f   :  { %v179_v39 = vpop.f32.mrf.mxu3 }
 0x234   :  { %v249_v40 = vpop.eup %248 }
 0x235   :  { %v185_v41 = vadd.f32 1.0, %v249_v40  ;;  %v188_v42 = vmul.f32 -0.5, %v249_v40  ;;  %v191_v44 = vand.u32 2147483647, %v249_v40 }
 0x237   :  { %250 = vlog2.f32 %v185_v41  ;;  %v189_v43 = vadd.f32 1.0, %v188_v42  ;;  %vm192_vm7 = vcmp.lt.f32.partialorder %v191_v44, 0.0004427343 }
 0x239   :  { %v190_v47 = vmul.f32 %v249_v40, %v189_v43 }
 0x23d   :  { %v251_v45 = vpop.eup %250 }
 0x23e   :  { %v187_v46 = vmul.f32 0.6931472, %v251_v45 }
 0x240   :  { %v193_v48 = vsel %vm192_vm7, %v190_v47, %v187_v46 }
 0x241   :  { %v194_v49 = vsel %vm181_vm9, %v178_v36, %v193_v48 }
 0x242   :  { %v196_v50 = vsel %vm195_vm8, %v194_v49, %v178_v36 }
 0x243   :  { %198 = vst.msk [vmem:[#allocation5] sm:$0xf] %vm197_vm10, %v196_v50 }
 0x244   :  { %209 = dma.vmem_to_hbm [thread:$0]  %s205_s19, 64, %s207_s6, [#allocation4]  }
 0x245   :  { %302 = dma.done.wait [#allocation4], 64  }
 0x246   :  { %303 = vsyncadd [#allocation4], 4294967232 }
 0x247   :  { %214 = vsyncpa [#allocation3], 1 }
 0x248   :  { %215 = vsyncpa [#allocation4], 1 }

</bundles_post_ra>
